<compile_context>
chip_gen: v7x
topology: tpu7x:2x2x1
jax: 0.10.0
libtpu: 0.0.40
codegen_flags: <defaults>
</compile_context>

<pallas_src>
import jax
import jax.numpy as jnp
from jax import lax
from jax.experimental import pallas as pl
from jax.experimental.pallas import tpu as pltpu


def _make_repvggdw_kernel(H, W):
    HW = H * W

    def kernel(x_ref, w_ref, c_ref, o_ref):
        # x_ref: (bc, HW)    rows = fused (n, c) pairs, flat spatial on lanes
        # w_ref: (9, bc, 1)  folded depthwise 3x3 taps (per row)
        # c_ref: (bc, 1)     folded additive constant (per row)
        # o_ref: (bc, HW)
        x = x_ref[...].astype(jnp.float32)

        # Flat-position / column iotas along the lane axis, computed once.
        pos = lax.broadcasted_iota(jnp.int32, (1, HW), 1)
        if (W & (W - 1)) == 0:
            col = jnp.bitwise_and(pos, W - 1)
        else:
            col = lax.rem(pos, W)

        # Validity of the +/-1 neighbor in H (row) and W (column) direction.
        h_ok = {-1: pos >= W, 0: None, 1: pos < (H - 1) * W}
        w_ok = {-1: col >= 1, 0: None, 1: col <= W - 2}

        # Center tap (holds the folded 1x1-conv + identity branch) + constant.
        acc = x * w_ref[4] + c_ref[...]

        for k in range(9):
            if k == 4:
                continue
            di, dj = k // 3 - 1, k % 3 - 1
            s = di * W + dj                                # flat source offset
            # shifted[p] = x[p + s] (cyclic rotation on the XLU; the wrap-around
            # values at image borders are zeroed by the mask folded into wk).
            shifted = pltpu.roll(x, shift=(-s) % HW, axis=1)
            m = h_ok[di]
            if w_ok[dj] is not None:
                m = w_ok[dj] if m is None else jnp.logical_and(m, w_ok[dj])
            wk = jnp.where(m, w_ref[k], 0.0)               # (bc, HW)
            acc = acc + shifted * wk

        o_ref[...] = acc.astype(o_ref.dtype)

    return kernel


def _vmem_budget_bytes():
    """(per-step block budget, scoped VMEM limit) derived from the hardware."""
    try:
        cap = int(pltpu.get_tpu_info().vmem_capacity_bytes)
    except Exception:
        cap = 64 * 1024 * 1024  # conservative (v7x per-core VMEM)
    return int(cap * 0.40), int(cap * 0.75)


def _pick_row_block(R, HW, itemsize, budget_bytes):
    """Block size along the fused (N*C) row axis.

    The block's second-minor dim must be a multiple of 8 or equal to R.
    Prefer the largest block whose ~double-buffered I/O fits the budget; for
    non-tiny problems keep >=2 grid steps so both v7x TensorCores get work.
    """
    cands = [d for d in range(R, 0, -1)
             if R % d == 0 and (d == R or d % 8 == 0)]
    fit = [d for d in cands if 4 * d * HW * itemsize <= budget_bytes]
    if fit:
        bc = fit[0]
    else:
        # TODO(synk): split the flattened spatial axis into H-slabs (1-row
        # halo) for feature maps so large that even an 8-row block overflows.
        bc = cands[-1]
    if R // bc == 1 and bc * HW * itemsize >= (2 << 20):
        smaller = [d for d in cands if d < R]
        if smaller:
            bc = smaller[0]
    return bc


def repvggdw_forward(x, w3, w1, b1, bn_in, bn_out, eps=1e-5):
    """x: (N, C, H, W). w3: (C, 3, 3). w1, b1: (C,).
    bn_in / bn_out: (gamma, beta, running_mean, running_var), each (C,)."""
    N, C, H, W = x.shape
    HW = H * W

    g_i, be_i, m_i, v_i = bn_in
    g_o, be_o, m_o, v_o = bn_out

    # Fold BatchNorms (inference mode) into per-channel affine terms.
    s_in = g_i * lax.rsqrt(v_i + eps)
    t_in = be_i - s_in * m_i
    s_out = g_o * lax.rsqrt(v_o + eps)
    t_out = be_o - s_out * m_o

    # out = s_out*( s_in*conv3(x) + t_in + w1*x + b1 + x ) + t_out
    #     = conv3(x, A*w3) + B*x + Cst
    A = s_out * s_in
    B = s_out * (1.0 + w1)
    Cst = s_out * (t_in + b1) + t_out

    Wf = (w3.reshape(C, 9) * A[:, None]).T                    # (9, C)
    Wf = Wf.at[4, :].add(B)                                    # fold 1x1 + id
    # Repeat per-channel params across the batch so the kernel can block the
    # fused (N*C) row axis freely (tiny arrays; no HBM concern).
    Wf = jnp.tile(Wf.reshape(9, 1, C), (1, N, 1)).reshape(9, N * C, 1)
    Wf = Wf.astype(jnp.float32)
    Cv = jnp.tile(Cst.reshape(1, C), (N, 1)).reshape(N * C, 1).astype(jnp.float32)

    # Free, contiguous reshape: NCHW stays NCHW in HBM, no transpose passes.
    x_rows = x.reshape(N * C, HW)

    budget, vmem_limit = _vmem_budget_bytes()
    bc = _pick_row_block(N * C, HW, x.dtype.itemsize, budget)
    grid = (N * C // bc,)

    out_rows = pl.pallas_call(
        _make_repvggdw_kernel(H, W),
        out_shape=jax.ShapeDtypeStruct((N * C, HW), x.dtype),
        grid=grid,
        in_specs=[
            pl.BlockSpec((bc, HW), lambda i: (i, 0)),
            pl.BlockSpec((9, bc, 1), lambda i: (0, i, 0)),
            pl.BlockSpec((bc, 1), lambda i: (i, 0)),
        ],
        out_specs=pl.BlockSpec((bc, HW), lambda i: (i, 0)),
        compiler_params=pltpu.CompilerParams(
            dimension_semantics=("parallel",),
            vmem_limit_bytes=vmem_limit),
    )(x_rows, Wf, Cv)

    return out_rows.reshape(N, C, H, W)


def repvggdw_reference(x, w3, w1, b1, bn_in, bn_out, eps=1e-5):
    """Pure-JAX reference matching the PyTorch forward (inference-mode BN)."""
    N, C, H, W = x.shape
    g_i, be_i, m_i, v_i = bn_in
    g_o, be_o, m_o, v_o = bn_out

    y3 = lax.conv_general_dilated(
        x, w3.reshape(C, 1, 3, 3),
        window_strides=(1, 1), padding=((1, 1), (1, 1)),
        dimension_numbers=("NCHW", "OIHW", "NCHW"),
        feature_group_count=C)
    s_in = g_i / jnp.sqrt(v_i + eps)
    t_in = be_i - s_in * m_i
    y3 = s_in[None, :, None, None] * y3 + t_in[None, :, None, None]

    y1 = w1[None, :, None, None] * x + b1[None, :, None, None]

    s = y3 + y1 + x
    s_out = g_o / jnp.sqrt(v_o + eps)
    t_out = be_o - s_out * m_o
    return s_out[None, :, None, None] * s + t_out[None, :, None, None]


if __name__ == "__main__":
    N, C, H, W = 2, 4, 16, 16  # ed = 4

    key = jax.random.PRNGKey(0)
    k_x, k_w3, k_w1, k_b1 = jax.random.split(key, 4)

    x = jax.random.normal(k_x, (N, C, H, W), dtype=jnp.float32)

    # conv (depthwise 3x3, no bias): (ed, 1, 3, 3) -> (C, 3, 3)
    w3 = jax.random.normal(k_w3, (C, 3, 3), dtype=jnp.float32) * 0.1
    # conv1 (depthwise 1x1, with bias): per-channel scale + bias
    w1 = jax.random.normal(k_w1, (C,), dtype=jnp.float32) * 0.1
    b1 = jax.random.normal(k_b1, (C,), dtype=jnp.float32) * 0.1

    # Inner BN of Conv2d_BN: weight=1, bias=0 (per module init), default stats.
    bn_in = (jnp.ones((C,), jnp.float32), jnp.zeros((C,), jnp.float32),
             jnp.zeros((C,), jnp.float32), jnp.ones((C,), jnp.float32))
    # Outer BN: PyTorch default init, default running stats.
    # TODO(synk): training-mode BN (batch statistics) not implemented; inference-mode BN used.
    bn_out = (jnp.ones((C,), jnp.float32), jnp.zeros((C,), jnp.float32),
              jnp.zeros((C,), jnp.float32), jnp.ones((C,), jnp.float32))

    out = repvggdw_forward(x, w3, w1, b1, bn_in, bn_out)
    out = jax.block_until_ready(out)

    ref = repvggdw_reference(x, w3, w1, b1, bn_in, bn_out)
    assert out.shape == (N, C, H, W)
    assert jnp.allclose(out, ref, atol=1e-4, rtol=1e-4)

    print("KERNEL_OK")
</pallas_src>

<mosaic_0001>
module attributes {stable_mosaic.version = 11 : i64} {
  func.func @kernel(%arg0: i32, %arg1: memref<8x256xf32, #tpu.memory_space<vmem>>, %arg2: memref<9x8x1xf32, #tpu.memory_space<vmem>>, %arg3: memref<8x1xf32, #tpu.memory_space<vmem>>, %arg4: memref<8x256xf32, #tpu.memory_space<vmem>>) attributes {dimension_semantics = [#tpu.dimension_semantics<parallel>], iteration_bounds = array<i64: 1>, scalar_prefetch = 0 : i64, scratch_operands = 0 : i64, tpu.core_type = #tpu.core_type<tc>, window_params = [{transform_indices = @transform_0, window_bounds = array<i64: 8, 256>}, {transform_indices = @transform_1, window_bounds = array<i64: 9, 8, 1>}, {transform_indices = @transform_2, window_bounds = array<i64: 8, 1>}, {transform_indices = @transform_3, window_bounds = array<i64: 8, 256>}]} {
    %c0 = arith.constant 0 : index
    %c0_0 = arith.constant 0 : index
    %0 = vector.load %arg1[%c0, %c0_0] : memref<8x256xf32, #tpu.memory_space<vmem>>, vector<8x256xf32>
    %1 = tpu.iota {dimensions = array<i32: 1>} : vector<1x256xi32>
    %c15_i32 = arith.constant 15 : i32
    %2 = vector.broadcast %c15_i32 : i32 to vector<1x256xi32>
    %3 = arith.andi %1, %2 : vector<1x256xi32>
    %c16_i32 = arith.constant 16 : i32
    %4 = vector.broadcast %c16_i32 : i32 to vector<1x256xi32>
    %5 = arith.cmpi sge, %1, %4 : vector<1x256xi32>
    %c240_i32 = arith.constant 240 : i32
    %6 = vector.broadcast %c240_i32 : i32 to vector<1x256xi32>
    %7 = arith.cmpi slt, %1, %6 : vector<1x256xi32>
    %c1_i32 = arith.constant 1 : i32
    %8 = vector.broadcast %c1_i32 : i32 to vector<1x256xi32>
    %9 = arith.cmpi sge, %3, %8 : vector<1x256xi32>
    %c14_i32 = arith.constant 14 : i32
    %10 = vector.broadcast %c14_i32 : i32 to vector<1x256xi32>
    %11 = arith.cmpi sle, %3, %10 : vector<1x256xi32>
    %c4 = arith.constant 4 : index
    %c0_1 = arith.constant 0 : index
    %c0_2 = arith.constant 0 : index
    %12 = vector.load %arg2[%c4, %c0_1, %c0_2] : memref<9x8x1xf32, #tpu.memory_space<vmem>>, vector<1x8x1xf32>
    %13 = vector.shape_cast %12 : vector<1x8x1xf32> to vector<8x1xf32>
    %14 = vector.broadcast %13 : vector<8x1xf32> to vector<8x256xf32>
    %15 = arith.mulf %0, %14 : vector<8x256xf32>
    %c0_3 = arith.constant 0 : index
    %c0_4 = arith.constant 0 : index
    %16 = vector.load %arg3[%c0_3, %c0_4] : memref<8x1xf32, #tpu.memory_space<vmem>>, vector<8x1xf32>
    %17 = vector.broadcast %16 : vector<8x1xf32> to vector<8x256xf32>
    %18 = arith.addf %15, %17 : vector<8x256xf32>
    %c17_i32 = arith.constant 17 : i32
    %19 = tpu.dynamic_rotate %0 by %c17_i32 dim 1 : vector<8x256xf32>, i32 -> vector<8x256xf32>
    %20 = arith.andi %5, %9 : vector<1x256xi1>
    %c0_5 = arith.constant 0 : index
    %c0_6 = arith.constant 0 : index
    %c0_7 = arith.constant 0 : index
    %21 = vector.load %arg2[%c0_5, %c0_6, %c0_7] : memref<9x8x1xf32, #tpu.memory_space<vmem>>, vector<1x8x1xf32>
    %22 = vector.shape_cast %21 : vector<1x8x1xf32> to vector<8x1xf32>
    %cst = arith.constant 0.000000e+00 : f32
    %23 = vector.shape_cast %20 : vector<1x256xi1> to vector<1x256xi1>
    %24 = vector.broadcast %23 : vector<1x256xi1> to vector<8x256xi1>
    %25 = vector.shape_cast %22 : vector<8x1xf32> to vector<8x1xf32>
    %26 = vector.broadcast %25 : vector<8x1xf32> to vector<8x256xf32>
    %27 = vector.broadcast %cst : f32 to vector<8x256xf32>
    %28 = arith.select %24, %26, %27 : vector<8x256xi1>, vector<8x256xf32>
    %29 = arith.mulf %19, %28 : vector<8x256xf32>
    %30 = arith.addf %18, %29 : vector<8x256xf32>
    %c16_i32_8 = arith.constant 16 : i32
    %31 = tpu.dynamic_rotate %0 by %c16_i32_8 dim 1 : vector<8x256xf32>, i32 -> vector<8x256xf32>
    %c1 = arith.constant 1 : index
    %c0_9 = arith.constant 0 : index
    %c0_10 = arith.constant 0 : index
    %32 = vector.load %arg2[%c1, %c0_9, %c0_10] : memref<9x8x1xf32, #tpu.memory_space<vmem>>, vector<1x8x1xf32>
    %33 = vector.shape_cast %32 : vector<1x8x1xf32> to vector<8x1xf32>
    %cst_11 = arith.constant 0.000000e+00 : f32
    %34 = vector.shape_cast %5 : vector<1x256xi1> to vector<1x256xi1>
    %35 = vector.broadcast %34 : vector<1x256xi1> to vector<8x256xi1>
    %36 = vector.shape_cast %33 : vector<8x1xf32> to vector<8x1xf32>
    %37 = vector.broadcast %36 : vector<8x1xf32> to vector<8x256xf32>
    %38 = vector.broadcast %cst_11 : f32 to vector<8x256xf32>
    %39 = arith.select %35, %37, %38 : vector<8x256xi1>, vector<8x256xf32>
    %40 = arith.mulf %31, %39 : vector<8x256xf32>
    %41 = arith.addf %30, %40 : vector<8x256xf32>
    %c15_i32_12 = arith.constant 15 : i32
    %42 = tpu.dynamic_rotate %0 by %c15_i32_12 dim 1 : vector<8x256xf32>, i32 -> vector<8x256xf32>
    %43 = arith.andi %5, %11 : vector<1x256xi1>
    %c2 = arith.constant 2 : index
    %c0_13 = arith.constant 0 : index
    %c0_14 = arith.constant 0 : index
    %44 = vector.load %arg2[%c2, %c0_13, %c0_14] : memref<9x8x1xf32, #tpu.memory_space<vmem>>, vector<1x8x1xf32>
    %45 = vector.shape_cast %44 : vector<1x8x1xf32> to vector<8x1xf32>
    %cst_15 = arith.constant 0.000000e+00 : f32
    %46 = vector.shape_cast %43 : vector<1x256xi1> to vector<1x256xi1>
    %47 = vector.broadcast %46 : vector<1x256xi1> to vector<8x256xi1>
    %48 = vector.shape_cast %45 : vector<8x1xf32> to vector<8x1xf32>
    %49 = vector.broadcast %48 : vector<8x1xf32> to vector<8x256xf32>
    %50 = vector.broadcast %cst_15 : f32 to vector<8x256xf32>
    %51 = arith.select %47, %49, %50 : vector<8x256xi1>, vector<8x256xf32>
    %52 = arith.mulf %42, %51 : vector<8x256xf32>
    %53 = arith.addf %41, %52 : vector<8x256xf32>
    %c1_i32_16 = arith.constant 1 : i32
    %54 = tpu.dynamic_rotate %0 by %c1_i32_16 dim 1 : vector<8x256xf32>, i32 -> vector<8x256xf32>
    %c3 = arith.constant 3 : index
    %c0_17 = arith.constant 0 : index
    %c0_18 = arith.constant 0 : index
    %55 = vector.load %arg2[%c3, %c0_17, %c0_18] : memref<9x8x1xf32, #tpu.memory_space<vmem>>, vector<1x8x1xf32>
    %56 = vector.shape_cast %55 : vector<1x8x1xf32> to vector<8x1xf32>
    %cst_19 = arith.constant 0.000000e+00 : f32
    %57 = vector.shape_cast %9 : vector<1x256xi1> to vector<1x256xi1>
    %58 = vector.broadcast %57 : vector<1x256xi1> to vector<8x256xi1>
    %59 = vector.shape_cast %56 : vector<8x1xf32> to vector<8x1xf32>
    %60 = vector.broadcast %59 : vector<8x1xf32> to vector<8x256xf32>
    %61 = vector.broadcast %cst_19 : f32 to vector<8x256xf32>
    %62 = arith.select %58, %60, %61 : vector<8x256xi1>, vector<8x256xf32>
    %63 = arith.mulf %54, %62 : vector<8x256xf32>
    %64 = arith.addf %53, %63 : vector<8x256xf32>
    %c255_i32 = arith.constant 255 : i32
    %65 = tpu.dynamic_rotate %0 by %c255_i32 dim 1 : vector<8x256xf32>, i32 -> vector<8x256xf32>
    %c5 = arith.constant 5 : index
    %c0_20 = arith.constant 0 : index
    %c0_21 = arith.constant 0 : index
    %66 = vector.load %arg2[%c5, %c0_20, %c0_21] : memref<9x8x1xf32, #tpu.memory_space<vmem>>, vector<1x8x1xf32>
    %67 = vector.shape_cast %66 : vector<1x8x1xf32> to vector<8x1xf32>
    %cst_22 = arith.constant 0.000000e+00 : f32
    %68 = vector.shape_cast %11 : vector<1x256xi1> to vector<1x256xi1>
    %69 = vector.broadcast %68 : vector<1x256xi1> to vector<8x256xi1>
    %70 = vector.shape_cast %67 : vector<8x1xf32> to vector<8x1xf32>
    %71 = vector.broadcast %70 : vector<8x1xf32> to vector<8x256xf32>
    %72 = vector.broadcast %cst_22 : f32 to vector<8x256xf32>
    %73 = arith.select %69, %71, %72 : vector<8x256xi1>, vector<8x256xf32>
    %74 = arith.mulf %65, %73 : vector<8x256xf32>
    %75 = arith.addf %64, %74 : vector<8x256xf32>
    %c241_i32 = arith.constant 241 : i32
    %76 = tpu.dynamic_rotate %0 by %c241_i32 dim 1 : vector<8x256xf32>, i32 -> vector<8x256xf32>
    %77 = arith.andi %7, %9 : vector<1x256xi1>
    %c6 = arith.constant 6 : index
    %c0_23 = arith.constant 0 : index
    %c0_24 = arith.constant 0 : index
    %78 = vector.load %arg2[%c6, %c0_23, %c0_24] : memref<9x8x1xf32, #tpu.memory_space<vmem>>, vector<1x8x1xf32>
    %79 = vector.shape_cast %78 : vector<1x8x1xf32> to vector<8x1xf32>
    %cst_25 = arith.constant 0.000000e+00 : f32
    %80 = vector.shape_cast %77 : vector<1x256xi1> to vector<1x256xi1>
    %81 = vector.broadcast %80 : vector<1x256xi1> to vector<8x256xi1>
    %82 = vector.shape_cast %79 : vector<8x1xf32> to vector<8x1xf32>
    %83 = vector.broadcast %82 : vector<8x1xf32> to vector<8x256xf32>
    %84 = vector.broadcast %cst_25 : f32 to vector<8x256xf32>
    %85 = arith.select %81, %83, %84 : vector<8x256xi1>, vector<8x256xf32>
    %86 = arith.mulf %76, %85 : vector<8x256xf32>
    %87 = arith.addf %75, %86 : vector<8x256xf32>
    %c240_i32_26 = arith.constant 240 : i32
    %88 = tpu.dynamic_rotate %0 by %c240_i32_26 dim 1 : vector<8x256xf32>, i32 -> vector<8x256xf32>
    %c7 = arith.constant 7 : index
    %c0_27 = arith.constant 0 : index
    %c0_28 = arith.constant 0 : index
    %89 = vector.load %arg2[%c7, %c0_27, %c0_28] : memref<9x8x1xf32, #tpu.memory_space<vmem>>, vector<1x8x1xf32>
    %90 = vector.shape_cast %89 : vector<1x8x1xf32> to vector<8x1xf32>
    %cst_29 = arith.constant 0.000000e+00 : f32
    %91 = vector.shape_cast %7 : vector<1x256xi1> to vector<1x256xi1>
    %92 = vector.broadcast %91 : vector<1x256xi1> to vector<8x256xi1>
    %93 = vector.shape_cast %90 : vector<8x1xf32> to vector<8x1xf32>
    %94 = vector.broadcast %93 : vector<8x1xf32> to vector<8x256xf32>
    %95 = vector.broadcast %cst_29 : f32 to vector<8x256xf32>
    %96 = arith.select %92, %94, %95 : vector<8x256xi1>, vector<8x256xf32>
    %97 = arith.mulf %88, %96 : vector<8x256xf32>
    %98 = arith.addf %87, %97 : vector<8x256xf32>
    %c239_i32 = arith.constant 239 : i32
    %99 = tpu.dynamic_rotate %0 by %c239_i32 dim 1 : vector<8x256xf32>, i32 -> vector<8x256xf32>
    %100 = arith.andi %7, %11 : vector<1x256xi1>
    %c8 = arith.constant 8 : index
    %c0_30 = arith.constant 0 : index
    %c0_31 = arith.constant 0 : index
    %101 = vector.load %arg2[%c8, %c0_30, %c0_31] : memref<9x8x1xf32, #tpu.memory_space<vmem>>, vector<1x8x1xf32>
    %102 = vector.shape_cast %101 : vector<1x8x1xf32> to vector<8x1xf32>
    %cst_32 = arith.constant 0.000000e+00 : f32
    %103 = vector.shape_cast %100 : vector<1x256xi1> to vector<1x256xi1>
    %104 = vector.broadcast %103 : vector<1x256xi1> to vector<8x256xi1>
    %105 = vector.shape_cast %102 : vector<8x1xf32> to vector<8x1xf32>
    %106 = vector.broadcast %105 : vector<8x1xf32> to vector<8x256xf32>
    %107 = vector.broadcast %cst_32 : f32 to vector<8x256xf32>
    %108 = arith.select %104, %106, %107 : vector<8x256xi1>, vector<8x256xf32>
    %109 = arith.mulf %99, %108 : vector<8x256xf32>
    %110 = arith.addf %98, %109 : vector<8x256xf32>
    %c0_33 = arith.constant 0 : index
    %c0_34 = arith.constant 0 : index
    %111 = vector.load %arg4[%c0_33, %c0_34] : memref<8x256xf32, #tpu.memory_space<vmem>>, vector<8x256xf32>
    tpu.vector_store %arg4[%c0_33, %c0_34], %110 {strides = array<i32>} : memref<8x256xf32, #tpu.memory_space<vmem>>, vector<8x256xf32>,
    return
  }
  func.func @transform_0(%arg0: i32) -> (i32, i32) {
    %c0_i32 = arith.constant 0 : i32
    %c0_i32_0 = arith.constant 0 : i32
    return %arg0, %c0_i32 : i32, i32
  }
  func.func @transform_1(%arg0: i32) -> (i32, i32, i32) {
    %c0_i32 = arith.constant 0 : i32
    %c0_i32_0 = arith.constant 0 : i32
    %c0_i32_1 = arith.constant 0 : i32
    return %c0_i32, %arg0, %c0_i32_0 : i32, i32, i32
  }
  func.func @transform_2(%arg0: i32) -> (i32, i32) {
    %c0_i32 = arith.constant 0 : i32
    %c0_i32_0 = arith.constant 0 : i32
    return %arg0, %c0_i32 : i32, i32
  }
  func.func @transform_3(%arg0: i32) -> (i32, i32) {
    %c0_i32 = arith.constant 0 : i32
    %c0_i32_0 = arith.constant 0 : i32
    return %arg0, %c0_i32 : i32, i32
  }
}

</mosaic_0001>

<bundles_post_ra>
// kernel: tpu_custom_call.1
= control target key start
LH: loop header
LB: loop body
LE: loop exit
PB: predicated region body
PF: predicated region fallthrough
CT: control target
= control target key end

     0   :  { %v306_v2 = vmov 0   ;;  %s535_s0 = inlined_call_operand.vmem [shape: f32[8,256], index: 0, kind: input, shape index: {}]   ;;  %s536_s1 = inlined_call_operand.vmem [shape: f32[9,8,1], index: 1, kind: input, shape index: {}]   ;;  %s537_s2 = inlined_call_operand.vmem [shape: f32[8,1], index: 2, kind: input, shape index: {}]   ;;  %s538_s3 = inlined_call_operand.hbm [shape: f32[8,256], index: 3, kind: output, shape index: {}]  }
   0x1   :  { %v39_v0 = vld [vmem:[%s537_s2] sm:$0xff]  ;;  %281 = vset.pattern.permute.xlu1 %v306_v2  ;;  %280 = vset.pattern.permute.xlu0 %v306_v2  ;;  %v263_v3 = vld [vmem:[%s536_s1 + $0x8] sm:$0xff] }
   0x2   :  { %v262_v1 = vld [vmem:[%s536_s1 + $0x20] sm:$0xff]  ;;  %42 = vperm.xlu1 %281, %v39_v0  }
   0x3   :  { %34 = vperm.xlu0 %280, %v262_v1   ;;  %v56_v4 = vld [vmem:[%s536_s1] sm:$0xff] }
   0x4   :  { %8 = vsyncpa [#allocation3], 0  ;;  %v265_v5 = vld [vmem:[%s536_s1 + $0x18] sm:$0xff]  ;;  %v264_v6 = vld [vmem:[%s536_s1 + $0x10] sm:$0xff]  ;;  %s307_s27 = smov 17   ;;  %s308_s30 = smov 16   ;;  %v17_v21 = vlaneseq }
   0x5   :  { %v357_v7 = vld [vmem:[%s535_s0 + $0x8] sm:$0xff]  ;;  %v362_v8 = vld [vmem:[%s535_s0] sm:$0xff]  ;;  %v267_v10 = vld [vmem:[%s536_s1 + $0x30] sm:$0xff]  ;;  %s309_s0 = smov 15   ;;  %s310_s8 = smov 1  }
   0x6   :  { %87 = vperm.xlu1 %281, %v263_v3   ;;  %v266_v9 = vld [vmem:[%s536_s1 + $0x28] sm:$0xff]  ;;  %v268_v11 = vld [vmem:[%s536_s1 + $0x38] sm:$0xff]  ;;  %v269_v12 = vld [vmem:[%s536_s1 + $0x40] sm:$0xff]  ;;  %s311_s11 = smov 127   ;;  %s312_s12 = smov 113   ;;  %v396_v24 = vand.u32 127, %v17_v21 }
   0x7   :  { %63 = vperm.xlu0 %280, %v56_v4   ;;  %s313_s13 = smov 112   ;;  %s314_s14 = smov 111  }
   0x8   :  { %v401_v27 = vadd.s32 128, %v396_v24  ;;  %v20_v28 = vand.u32 15, %v396_v24  ;;  %vm22_vm0 = vcmp.ge.s32.totalorder %v396_v24, 16  ;;  %vm51_vm2 = vcmp.lt.s32.totalorder %v396_v24, 17  ;;  %s315_s1 = smov [#allocation2]  }
   0x9   :  { %vm76_vm6 = vcmp.lt.s32.totalorder %v396_v24, 16  ;;  %vm100_vm9 = vcmp.lt.s32.totalorder %v396_v24, 15  ;;  %vm126_vm10 = vcmp.lt.s32.totalorder %v396_v24, 1  ;;  %vm150_vm12 = vcmp.lt.s32.totalorder %v396_v24, 127  ;;  %s254_s15 = sshll.u32 %s315_s1, 4  ;;  %s255_s15 = int_to_ptr.vmem [resolvable:$true] %s254_s15 }
   0xa   :  { %137 = vperm.xlu1 %281, %v265_v5   ;;  %v21_v31 = vand.u32 15, %v401_v27  ;;  %vm406_vm1 = vcmp.ge.s32.totalorder %v20_v28, 1  ;;  %vm425_vm5 = vcmp.le.s32.totalorder %v20_v28, 14  ;;  %vm25_vm8 = vcmp.lt.s32.totalorder %v401_v27, 240  ;;  %s282_s16 = scalar_lea.vmem %s255_s15, 256  ;;  %p287_p1 = scmp.lt.s32.totalorder %s255_s15, %s255_s15 }
   0xb   :  { %113 = vperm.xlu0 %280, %v264_v6   ;;  %vm421_vm4 = vmand %vm22_vm0, %vm406_vm1  ;;  %vm174_vm13 = vcmp.lt.s32.totalorder %v396_v24, 113  ;;  %vm200_vm14 = vcmp.lt.s32.totalorder %v396_v24, 112  ;;  %p283_p0 = scmp.ne.s32.totalorder %s255_s15, %s282_s16  ;;  %p288_p2 = scmp.lt.s32.totalorder %s282_s16, %s282_s16 }
   0xc   :  { %vm413_vm3 = vcmp.ge.s32.totalorder %v21_v31, 1  ;;  %vm430_vm7 = vcmp.le.s32.totalorder %v21_v31, 14  ;;  %vm449_vm11 = vmand %vm22_vm0, %vm425_vm5 }
   0xd   :  { %vm480_vm15 = vmand %vm25_vm8, %vm413_vm3  ;;  %p289_p3 = por %p288_p2, %p287_p1 }
   0xe   :  { %49 = vrot.lane.b32.xlu1 %v357_v7, %s307_s27 }
   0xf   :  { %47 = vrot.lane.b32.xlu0 %v362_v8, %s307_s27  ;;  %p290_p4 = pnand %p289_p3, %p283_p0 }
  0x12   :  { %72 = vrot.lane.b32.xlu1 %v362_v8, %s308_s30 }
  0x13   :  { %161 = vperm.xlu0 %280, %v266_v9  }
  0x16   :  { %187 = vperm.xlu1 %281, %v267_v10  }
  0x17   :  { %74 = vrot.lane.b32.xlu0 %v357_v7, %s308_s30 }
  0x1a   :  { %98 = vrot.lane.b32.xlu1 %v357_v7, %s309_s0 }
  0x1b   :  { %96 = vrot.lane.b32.xlu0 %v362_v8, %s309_s0 }
  0x1e   :  { %122 = vrot.lane.b32.xlu1 %v362_v8, %s310_s8 }
  0x1f   :  { %211 = vperm.xlu0 %280, %v268_v11  }
  0x22   :  { %237 = vperm.xlu1 %281, %v269_v12  }
  0x23   :  { %124 = vrot.lane.b32.xlu0 %v357_v7, %s310_s8 }
  0x26   :  { %148 = vrot.lane.b32.xlu1 %v357_v7, %s311_s11 }
  0x27   :  { %146 = vrot.lane.b32.xlu0 %v362_v8, %s311_s11 }
  0x2a   :  { %172 = vrot.lane.b32.xlu1 %v357_v7, %s312_s12 }
  0x2b   :  { %170 = vrot.lane.b32.xlu0 %v362_v8, %s312_s12 }
  0x2e   :  { %198 = vrot.lane.b32.xlu1 %v357_v7, %s313_s13 }
  0x2f   :  { %196 = vrot.lane.b32.xlu0 %v362_v8, %s313_s13 }
  0x32   :  { %222 = vrot.lane.b32.xlu1 %v357_v7, %s314_s14 }
  0x33   :  { %220 = vrot.lane.b32.xlu0 %v362_v8, %s314_s14 }
  0x81   :  { %v43_v13 = vpop.permute.xlu1 %42 }
  0x82   :  { %v35_v14 = vpop.permute.xlu0 %34 }
  0x83   :  { %v37_v41 = vmul.f32 %v35_v14, %v362_v8  ;;  %v38_v42 = vmul.f32 %v35_v14, %v357_v7 }
  0x85   :  { %v88_v15 = vpop.permute.xlu1 %87  ;;  %v45_v55 = vadd.f32 %v43_v13, %v37_v41  ;;  %v46_v56 = vadd.f32 %v43_v13, %v38_v42 }
  0x86   :  { %v64_v16 = vpop.permute.xlu0 %63  ;;  %v90_v52 = vsel %vm22_vm0, %v88_v15, 0.0  ;;  %vm224_vm0 = vcmp.lt.s32.totalorder %v396_v24, 111 }
  0x87   :  { %v66_v45 = vsel %vm421_vm4, %v64_v16, 0.0  ;;  %v67_v46 = vsel %vm413_vm3, %v64_v16, 0.0 }
  0x89   :  { %v392_v17 = vpop.permute.xlu1 %137 }
  0x8a   :  { %v114_v18 = vpop.permute.xlu0 %113  ;;  %v140_v5 = vsel %vm406_vm1, %v392_v17, 0.0  ;;  %v141_v6 = vsel %vm413_vm3, %v392_v17, 0.0 }
  0x8b   :  { %v116_v61 = vsel %vm449_vm11, %v114_v18, 0.0  ;;  %v117_v62 = vsel %vm430_vm7, %v114_v18, 0.0 }
  0x8d   :  { %v50_v19 = vpop.permute.xlu1 %49 }
  0x8e   :  { %v48_v20 = vpop.permute.xlu0 %47 }
  0x8f   :  { %v52_v39 = vsel %vm51_vm2, %v48_v20, %v50_v19  ;;  %v53_v40 = vsel %vm51_vm2, %v50_v19, %v48_v20 }
  0x90   :  { %v68_v50 = vmul.f32 %v66_v45, %v53_v40  ;;  %v69_v51 = vmul.f32 %v67_v46, %v52_v39 }
  0x91   :  { %v73_v22 = vpop.permute.xlu1 %72 }
  0x92   :  { %v394_v23 = vpop.permute.xlu0 %161  ;;  %v70_v1 = vadd.f32 %v68_v50, %v45_v55  ;;  %v71_v2 = vadd.f32 %v69_v51, %v46_v56 }
  0x93   :  { %v164_v16 = vsel %vm425_vm5, %v394_v23, 0.0  ;;  %v165_v17 = vsel %vm430_vm7, %v394_v23, 0.0 }
  0x95   :  { %v398_v25 = vpop.permute.xlu1 %187 }
  0x96   :  { %v75_v26 = vpop.permute.xlu0 %74  ;;  %v190_v28 = vsel %vm406_vm1, %v398_v25, 0.0  ;;  %vm512_vm1 = vmand %vm25_vm8, %vm430_vm7 }
  0x97   :  { %v77_v47 = vsel %vm76_vm6, %v73_v22, %v75_v26  ;;  %v78_v48 = vsel %vm76_vm6, %v75_v26, %v73_v22 }
  0x98   :  { %v92_v57 = vmul.f32 %v90_v52, %v78_v48  ;;  %v93_v58 = vmul.f32 %v88_v15, %v77_v47 }
  0x99   :  { %v99_v29 = vpop.permute.xlu1 %98 }
  0x9a   :  { %v97_v30 = vpop.permute.xlu0 %96  ;;  %v94_v10 = vadd.f32 %v92_v57, %v70_v1  ;;  %v95_v11 = vadd.f32 %v93_v58, %v71_v2 }
  0x9b   :  { %v101_v53 = vsel %vm100_vm9, %v97_v30, %v99_v29  ;;  %v102_v54 = vsel %vm100_vm9, %v99_v29, %v97_v30  ;;  %v191_v29 = vsel %vm480_vm15, %v398_v25, 0.0 }
  0x9c   :  { %v118_v3 = vmul.f32 %v116_v61, %v102_v54  ;;  %v119_v4 = vmul.f32 %v117_v62, %v101_v53 }
  0x9d   :  { %v123_v33 = vpop.permute.xlu1 %122 }
  0x9e   :  { %v411_v34 = vpop.permute.xlu0 %211  ;;  %v120_v20 = vadd.f32 %v118_v3, %v94_v10  ;;  %v121_v21 = vadd.f32 %v119_v4, %v95_v11 }
  0x9f   :  { %v215_v39 = vsel %vm25_vm8, %v411_v34, 0.0 }
  0xa1   :  { %v438_v43 = vpop.permute.xlu1 %237 }
  0xa2   :  { %v125_v44 = vpop.permute.xlu0 %124  ;;  %v240_v24 = vsel %vm425_vm5, %v438_v43, 0.0  ;;  %v241_v27 = vsel %vm512_vm1, %v438_v43, 0.0 }
  0xa3   :  { %v127_v63 = vsel %vm126_vm10, %v123_v33, %v125_v44  ;;  %v128_v0 = vsel %vm126_vm10, %v125_v44, %v123_v33 }
  0xa4   :  { %v142_v12 = vmul.f32 %v140_v5, %v128_v0  ;;  %v143_v13 = vmul.f32 %v141_v6, %v127_v63 }
  0xa5   :  { %v149_v59 = vpop.permute.xlu1 %148 }
  0xa6   :  { %v147_v60 = vpop.permute.xlu0 %146  ;;  %v144_v30 = vadd.f32 %v142_v12, %v120_v20  ;;  %v145_v23 = vadd.f32 %v143_v13, %v121_v21 }
  0xa7   :  { %v151_v7 = vsel %vm150_vm12, %v147_v60, %v149_v59  ;;  %v152_v8 = vsel %vm150_vm12, %v149_v59, %v147_v60 }
  0xa8   :  { %v166_v22 = vmul.f32 %v164_v16, %v151_v7  ;;  %v167_v26 = vmul.f32 %v165_v17, %v152_v8 }
  0xa9   :  { %v173_v14 = vpop.permute.xlu1 %172 }
  0xaa   :  { %v171_v15 = vpop.permute.xlu0 %170  ;;  %v168_v41 = vadd.f32 %v166_v22, %v144_v30  ;;  %v169_v42 = vadd.f32 %v167_v26, %v145_v23 }
  0xab   :  { %v175_v18 = vsel %vm174_vm13, %v171_v15, %v173_v14  ;;  %v176_v19 = vsel %vm174_vm13, %v173_v14, %v171_v15 }
  0xac   :  { %v192_v31 = vmul.f32 %v190_v28, %v175_v18  ;;  %v193_v33 = vmul.f32 %v191_v29, %v176_v19 }
  0xad   :  { %v199_v35 = vpop.permute.xlu1 %198 }
  0xae   :  { %v197_v36 = vpop.permute.xlu0 %196  ;;  %v194_v46 = vadd.f32 %v192_v31, %v168_v41  ;;  %v195_v47 = vadd.f32 %v193_v33, %v169_v42 }
  0xaf   :  { %v201_v40 = vsel %vm200_vm14, %v197_v36, %v199_v35  ;;  %v202_v32 = vsel %vm200_vm14, %v199_v35, %v197_v36 }
  0xb0   :  { %v216_v44 = vmul.f32 %v411_v34, %v201_v40  ;;  %v217_v45 = vmul.f32 %v215_v39, %v202_v32 }
  0xb1   :  { %v223_v48 = vpop.permute.xlu1 %222 }
  0xb2   :  { %v221_v49 = vpop.permute.xlu0 %220  ;;  %v218_v51 = vadd.f32 %v216_v44, %v194_v46  ;;  %v219_v52 = vadd.f32 %v217_v45, %v195_v47 }
  0xb3   :  { %v225_v38 = vsel %vm224_vm0, %v221_v49, %v223_v48  ;;  %v226_v50 = vsel %vm224_vm0, %v223_v48, %v221_v49 }
  0xb4   :  { %v242_v34 = vmul.f32 %v240_v24, %v225_v38  ;;  %v243_v53 = vmul.f32 %v241_v27, %v226_v50 }
  0xb6   :  { %v244_v54 = vadd.f32 %v242_v34, %v218_v51  ;;  %v245_v55 = vadd.f32 %v243_v53, %v219_v52 }
  0xb8   :  { %246 = vst [vmem:[#allocation2] sm:$0xff] %v244_v54  ;;  %247 = vst [vmem:[#allocation2 + $0x8] sm:$0xff] %v245_v55 }
  0xb9   :  { %293 = shalt.err (!%p290_p4)
}
  0xba   :  { %s294_s19 = scalar_lea.hbm %s538_s3, 256 }
  0xbb   :  { %p295_p5 = scmp.ne.s32.totalorder %s538_s3, %s294_s19  ;;  %p298_p6 = scmp.lt.u32.totalorder %s294_s19, %s538_s3 }
  0xbd   :  { %p300_p7 = pnand %p298_p6, %p295_p5 }
  0xbf   :  { %303 = shalt.err (!%p300_p7)
}
  0xc0   :  { %257 = dma.vmem_to_hbm [thread:$0]  %s255_s15, 256, %s538_s3, [#allocation3]  }
  0xc1   :  { %304 = dma.done.wait [#allocation3], 256  }
  0xc2   :  { %305 = vsyncadd [#allocation3], 4294967040 }
  0xc3   :  { %261 = vsyncpa [#allocation3], 1 }

</bundles_post_ra>
